<compile_context>
chip_gen: v5e
topology: v5e:2x2
jax: 0.10.0
libtpu: 0.0.40
codegen_flags: <defaults>
</compile_context>

<pallas_src>
import functools
import math

import jax
import jax.numpy as jnp
from jax.experimental import pallas as pl
from jax.experimental.pallas import tpu as pltpu

BN_EPS = 1e-5
_MIB = 1024 * 1024


# --------------------------------------------------------------------------- tiling
def _choose_tiles(N, Cin, HW, target_x_block_bytes):
    """Pick (Nb, T, n_t): batch fold + lane-dense spatial tile so each grid step
    moves ~target bytes of x (per-step overhead ~0.35us; tiny blocks are
    step-overhead-bound, ~1 MiB blocks reach ~85% of HBM roofline)."""
    if HW % 128 == 0:
        cap_elems = max(128, (target_x_block_bytes // (Cin * 4)) // 128 * 128)
        T = 128
        cand = 128
        while cand <= HW:
            if HW % cand == 0 and cand <= cap_elems:
                T = cand
            cand += 128
    else:
        # TODO(synk): pad HW to a multiple of 128 with masked stats/stores to keep the
        # output lane-dense; for now fall back to a single full-extent tile.
        T = HW
    n_t = HW // T
    Nb = 1
    for d in range(1, N + 1):
        if N % d == 0 and d * Cin * T * 4 <= max(target_x_block_bytes, Cin * T * 4):
            Nb = d
    return Nb, T, n_t


def _padded_vmem_bytes(shape, itemsize=4):
    """VMEM footprint including (8,128) sublane/lane padding on the last two dims."""
    if len(shape) < 2:
        return int(math.prod(shape)) * itemsize if shape else itemsize
    lead = int(math.prod(shape[:-2]))
    sub = -(-shape[-2] // 8) * 8
    lane = -(-shape[-1] // 128) * 128
    return lead * sub * lane * itemsize


def _tree_sum(terms):
    """Pairwise (tree) accumulation — shorter VALU dependency chain than a serial add."""
    while len(terms) > 1:
        nxt = [terms[i] + terms[i + 1] for i in range(0, len(terms) - 1, 2)]
        if len(terms) % 2:
            nxt.append(terms[-1])
        terms = nxt
    return terms[0]


# --------------------------------------------------------------- fused single-pass path
def _fused_kernel(x_ref, noise_ref, gamma_ref, beta_ref, w_ref, b_ref, o_ref,
                  sum_sc, sumsq_sc, scale_sc, shift_sc, y_cache,
                  *, inv_m, n_steps, nb):
    # grid = (phase, spatial_tile, batch_block); phase 0 = stats, phase 1 = apply.
    p = pl.program_id(0)
    t = pl.program_id(1)
    n = pl.program_id(2)
    step = t * nb + n                      # linear id into the resident y cache

    @pl.when(jnp.logical_and(p == 0, step == 0))
    def _init():
        sum_sc[...] = jnp.zeros_like(sum_sc)
        sumsq_sc[...] = jnp.zeros_like(sumsq_sc)

    @pl.when(p == 0)
    def _stats():
        y = jnp.maximum(x_ref[...] + noise_ref[...], 0.0)          # (Nb, Cin, T)
        y_cache[step] = y                                          # keep resident in VMEM
        sum_sc[...] += jnp.sum(jnp.sum(y, axis=-1, keepdims=True), axis=0)       # (Cin,1)
        sumsq_sc[...] += jnp.sum(jnp.sum(y * y, axis=-1, keepdims=True), axis=0)

    @pl.when(jnp.logical_and(p == 0, step == n_steps - 1))
    def _fold():
        mean = sum_sc[...] * inv_m                                  # (Cin, 1)
        var = jnp.maximum(sumsq_sc[...] * inv_m - mean * mean, 0.0)  # clamp 1-pass variance
        inv_std = jax.lax.rsqrt(var + BN_EPS)
        s = gamma_ref[...] * inv_std
        scale_sc[...] = s
        shift_sc[...] = beta_ref[...] - s * mean

    @pl.when(p == 1)
    def _apply():
        y = y_cache[step]                                           # (Nb, Cin, T)
        yn = y * scale_sc[...] + shift_sc[...]                      # per-channel BN, (Cin,1) bcast
        w = w_ref[...]                                              # (Cout, Cin)
        cin = w.shape[1]
        terms = [w[:, ci:ci + 1][None, :, :] * yn[:, ci:ci + 1, :] for ci in range(cin)]
        acc = _tree_sum(terms) + b_ref[...][None, :, :]             # (Nb, Cout, T)
        o_ref[...] = acc.astype(o_ref.dtype)


def _fused_forward(x3, noise2, gamma, beta, conv_w, conv_b, Nb, T, n_t, vmem_limit):
    N, Cin, HW = x3.shape
    Cout = conv_w.shape[0]
    nb = N // Nb
    n_steps = n_t * nb
    grid = (2, n_t, nb)    # phase outermost; spatial outer / batch inner (noise block reused)

    # During phase 1 the x/noise maps are pinned to their last phase-0 block so no
    # redundant HBM fetches happen; the output map is pinned to phase-1's first block
    # during phase 0 so no garbage writeback occurs before phase 1 writes it.
    x_map = lambda p, t, n: (n * (1 - p) + (nb - 1) * p, 0, t * (1 - p) + (n_t - 1) * p)
    nz_map = lambda p, t, n: (0, t * (1 - p) + (n_t - 1) * p)
    o_map = lambda p, t, n: (n * p, 0, t * p)
    const2 = lambda p, t, n: (0, 0)

    return pl.pallas_call(
        functools.partial(_fused_kernel, inv_m=1.0 / float(N * HW),
                          n_steps=n_steps, nb=nb),
        out_shape=jax.ShapeDtypeStruct((N, Cout, HW), jnp.float32),
        grid=grid,
        in_specs=[
            pl.BlockSpec((Nb, Cin, T), x_map),
            pl.BlockSpec((Cin, T), nz_map),
            pl.BlockSpec((Cin, 1), const2),
            pl.BlockSpec((Cin, 1), const2),
            pl.BlockSpec((Cout, Cin), const2),
            pl.BlockSpec((Cout, 1), const2),
        ],
        out_specs=pl.BlockSpec((Nb, Cout, T), o_map),
        scratch_shapes=[
            pltpu.VMEM((Cin, 1), jnp.float32),       # sum
            pltpu.VMEM((Cin, 1), jnp.float32),       # sum of squares
            pltpu.VMEM((Cin, 1), jnp.float32),       # folded BN scale
            pltpu.VMEM((Cin, 1), jnp.float32),       # folded BN shift
            pltpu.VMEM((n_steps, Nb, Cin, T), jnp.float32),   # resident relu(x+noise)
        ],
        compiler_params=pltpu.CompilerParams(
            # shared accumulators + phase ordering -> sequential grid on one core
            dimension_semantics=("arbitrary", "arbitrary", "arbitrary"),
            vmem_limit_bytes=vmem_limit),
    )(x3, noise2,
      gamma.reshape(Cin, 1).astype(jnp.float32),
      beta.reshape(Cin, 1).astype(jnp.float32),
      conv_w.astype(jnp.float32),
      conv_b.reshape(Cout, 1).astype(jnp.float32))


# ------------------------------------------------------------------ two-pass fallback
def _stats_kernel(x_ref, noise_ref, psum_ref, psumsq_ref):
    # Per-spatial-block partial sums (output indexed by the spatial grid axis only),
    # accumulated across the inner batch axis -> spatial axis can be "parallel".
    n = pl.program_id(1)

    @pl.when(n == 0)
    def _init():
        psum_ref[...] = jnp.zeros_like(psum_ref)
        psumsq_ref[...] = jnp.zeros_like(psumsq_ref)

    y = jnp.maximum(x_ref[...] + noise_ref[...], 0.0)               # (Nb, Cin, T)
    psum_ref[...] += jnp.sum(jnp.sum(y, axis=-1, keepdims=True), axis=0, keepdims=True)
    psumsq_ref[...] += jnp.sum(jnp.sum(y * y, axis=-1, keepdims=True), axis=0, keepdims=True)


def _apply_kernel(x_ref, noise_ref, w_ref, b_ref, o_ref):
    y = jnp.maximum(x_ref[...] + noise_ref[...], 0.0)               # (Nb, Cin, T)
    w = w_ref[...]                                                  # (Cout, Cin), BN folded
    cin = w.shape[1]
    terms = [w[:, ci:ci + 1][None, :, :] * y[:, ci:ci + 1, :] for ci in range(cin)]
    acc = _tree_sum(terms) + b_ref[...][None, :, :]                 # (Nb, Cout, T)
    o_ref[...] = acc.astype(o_ref.dtype)


def _two_pass_forward(x3, noise2, gamma, beta, conv_w, conv_b, Nb, T, n_t, vmem_limit):
    N, Cin, HW = x3.shape
    Cout = conv_w.shape[0]
    nb = N // Nb
    grid = (n_t, nb)   # spatial outer (parallel partials), batch inner (reduction)

    psum, psumsq = pl.pallas_call(
        _stats_kernel,
        out_shape=(jax.ShapeDtypeStruct((n_t, Cin, 1), jnp.float32),
                   jax.ShapeDtypeStruct((n_t, Cin, 1), jnp.float32)),
        grid=grid,
        in_specs=[
            pl.BlockSpec((Nb, Cin, T), lambda t, n: (n, 0, t)),
            pl.BlockSpec((Cin, T), lambda t, n: (0, t)),            # never batch-broadcast
        ],
        out_specs=(pl.BlockSpec((1, Cin, 1), lambda t, n: (t, 0, 0)),
                   pl.BlockSpec((1, Cin, 1), lambda t, n: (t, 0, 0))),
        compiler_params=pltpu.CompilerParams(
            dimension_semantics=("parallel", "arbitrary"),          # v7x: split across TCs
            vmem_limit_bytes=vmem_limit),
    )(x3, noise2)

    inv_m = 1.0 / float(N * HW)
    sum_c = jnp.sum(psum, axis=0).reshape(Cin)
    sumsq_c = jnp.sum(psumsq, axis=0).reshape(Cin)
    mean = sum_c * inv_m
    var = jnp.maximum(sumsq_c * inv_m - mean * mean, 0.0)           # clamp 1-pass variance
    inv_std = jax.lax.rsqrt(var + BN_EPS)

    # Fold BN affine + 1x1 conv:  conv(bn(y)) = (W*a) @ y + (W @ c + b)
    a = gamma * inv_std
    c = beta - a * mean
    w_eff = (conv_w * a[None, :]).astype(jnp.float32)
    b_eff = (conv_b + conv_w @ c).reshape(Cout, 1).astype(jnp.float32)

    return pl.pallas_call(
        _apply_kernel,
        out_shape=jax.ShapeDtypeStruct((N, Cout, HW), jnp.float32),
        grid=grid,
        in_specs=[
            pl.BlockSpec((Nb, Cin, T), lambda t, n: (n, 0, t)),
            pl.BlockSpec((Cin, T), lambda t, n: (0, t)),
            pl.BlockSpec((Cout, Cin), lambda t, n: (0, 0)),
            pl.BlockSpec((Cout, 1), lambda t, n: (0, 0)),
        ],
        out_specs=pl.BlockSpec((Nb, Cout, T), lambda t, n: (n, 0, t)),
        compiler_params=pltpu.CompilerParams(
            dimension_semantics=("parallel", "parallel"),
            vmem_limit_bytes=vmem_limit),
    )(x3, noise2, w_eff, b_eff)


# --------------------------------------------------------------------------- wrapper
def noise_layer_forward(x_nchw, noise_chw, gamma, beta, conv_w, conv_b,
                        *, target_x_block_bytes=1 * _MIB, force_two_pass=False):
    """x_nchw: (N, Cin, H, W) f32;  noise_chw: (Cin, H, W) fixed noise parameter
       gamma/beta: (Cin,) BN affine;  conv_w: (Cout, Cin) 1x1 conv;  conv_b: (Cout,)
       returns (N, Cout, H, W)."""
    N, Cin, H, W = x_nchw.shape
    Cout = conv_w.shape[0]
    HW = H * W

    Nb, T, n_t = _choose_tiles(N, Cin, HW, target_x_block_bytes)
    nb = N // Nb
    n_steps = n_t * nb

    # Channel-major views: pure contiguous reshapes, no data movement.
    x3 = x_nchw.reshape(N, Cin, HW)
    noise2 = noise_chw.reshape(Cin, HW)

    # VMEM budget (with (8,128) layout padding): resident y cache + double-buffered blocks.
    cache_bytes = _padded_vmem_bytes((n_steps, Nb, Cin, T))
    block_bytes = 2 * (_padded_vmem_bytes((Nb, Cin, T))
                       + _padded_vmem_bytes((Nb, Cout, T))
                       + _padded_vmem_bytes((Cin, T)))
    fused_need = cache_bytes + block_bytes
    FUSED_BUDGET = 32 * _MIB   # sized against v7x's 64 MiB physical VMEM (48 MiB limit)

    if (not force_two_pass) and fused_need <= FUSED_BUDGET:
        out3 = _fused_forward(x3, noise2, gamma, beta, conv_w, conv_b,
                              Nb, T, n_t, vmem_limit=48 * _MIB)
    else:
        out3 = _two_pass_forward(x3, noise2, gamma, beta, conv_w, conv_b,
                                 Nb, T, n_t, vmem_limit=32 * _MIB)
    return out3.reshape(N, Cout, H, W)


# -------------------------------------------------------------------------- reference
def _reference(x_nchw, noise_chw, gamma, beta, conv_w, conv_b):
    """Pure-JAX reference mirroring the PyTorch forward (training-mode BN)."""
    y = jnp.maximum(x_nchw + noise_chw[None], 0.0)
    mean = jnp.mean(y, axis=(0, 2, 3), keepdims=True)
    var = jnp.mean((y - mean) ** 2, axis=(0, 2, 3), keepdims=True)
    yn = (y - mean) / jnp.sqrt(var + BN_EPS)
    yn = yn * gamma[None, :, None, None] + beta[None, :, None, None]
    return jnp.einsum("nchw,oc->nohw", yn, conv_w) + conv_b[None, :, None, None]


if __name__ == "__main__":
    # Module config
    in_planes, out_planes, level = 4, 8, 0.1
    N, H, W = 2, 16, 16

    key = jax.random.PRNGKey(0)
    k_x, k_noise, k_w, k_b = jax.random.split(key, 4)

    x = jax.random.normal(k_x, (N, in_planes, H, W), dtype=jnp.float32)

    # Noise parameter: matches `self.noise.resize_(x[0].shape).uniform_(); (2*u-1)*level`
    u = jax.random.uniform(k_noise, (in_planes, H, W), dtype=jnp.float32)
    noise = (2.0 * u - 1.0) * level

    # BatchNorm2d default init: weight=1, bias=0
    gamma = jnp.ones((in_planes,), dtype=jnp.float32)
    beta = jnp.zeros((in_planes,), dtype=jnp.float32)

    # 1x1 Conv2d params (kernel dims squeezed)
    conv_w = 0.1 * jax.random.normal(k_w, (out_planes, in_planes), dtype=jnp.float32)
    conv_b = 0.1 * jax.random.normal(k_b, (out_planes,), dtype=jnp.float32)

    ref = _reference(x, noise, gamma, beta, conv_w, conv_b)

    # Fused single-pass path (default at this size: y fits comfortably in VMEM).
    out = noise_layer_forward(x, noise, gamma, beta, conv_w, conv_b)
    out = jax.block_until_ready(out)
    assert out.shape == (N, out_planes, H, W)
    assert jnp.max(jnp.abs(out - ref)) < 1e-4, "fused path mismatch vs reference"

    # Two-pass fallback path (exercised explicitly so both code paths are validated).
    out2 = noise_layer_forward(x, noise, gamma, beta, conv_w, conv_b, force_two_pass=True)
    out2 = jax.block_until_ready(out2)
    assert jnp.max(jnp.abs(out2 - ref)) < 1e-4, "two-pass path mismatch vs reference"

    print("KERNEL_OK")
</pallas_src>

<mosaic_0001>
module attributes {stable_mosaic.version = 11 : i64} {
  func.func @_fused_kernel(%arg0: i32, %arg1: i32, %arg2: i32, %arg3: memref<2x4x256xf32, #tpu.memory_space<vmem>>, %arg4: memref<4x256xf32, #tpu.memory_space<vmem>>, %arg5: memref<4x1xf32, #tpu.memory_space<vmem>>, %arg6: memref<4x1xf32, #tpu.memory_space<vmem>>, %arg7: memref<8x4xf32, #tpu.memory_space<vmem>>, %arg8: memref<8x1xf32, #tpu.memory_space<vmem>>, %arg9: memref<2x8x256xf32, #tpu.memory_space<vmem>>, %arg10: memref<4x1xf32, #tpu.memory_space<vmem>>, %arg11: memref<4x1xf32, #tpu.memory_space<vmem>>, %arg12: memref<4x1xf32, #tpu.memory_space<vmem>>, %arg13: memref<4x1xf32, #tpu.memory_space<vmem>>, %arg14: memref<1x2x4x256xf32, #tpu.memory_space<vmem>>) attributes {dimension_semantics = [#tpu.dimension_semantics<arbitrary>, #tpu.dimension_semantics<arbitrary>, #tpu.dimension_semantics<arbitrary>], iteration_bounds = array<i64: 2, 1, 1>, scalar_prefetch = 0 : i64, scratch_operands = 5 : i64, tpu.core_type = #tpu.core_type<tc>, window_params = [{transform_indices = @transform_0, window_bounds = array<i64: 2, 4, 256>}, {transform_indices = @transform_1, window_bounds = array<i64: 4, 256>}, {pipeline_mode = #tpu.pipeline_mode<synchronous>, transform_indices = @transform_2, window_bounds = array<i64: 4, 1>}, {pipeline_mode = #tpu.pipeline_mode<synchronous>, transform_indices = @transform_3, window_bounds = array<i64: 4, 1>}, {pipeline_mode = #tpu.pipeline_mode<synchronous>, transform_indices = @transform_4, window_bounds = array<i64: 8, 4>}, {pipeline_mode = #tpu.pipeline_mode<synchronous>, transform_indices = @transform_5, window_bounds = array<i64: 8, 1>}, {transform_indices = @transform_6, window_bounds = array<i64: 2, 8, 256>}]} {
    %c1_i32 = arith.constant 1 : i32
    %0 = arith.muli %arg1, %c1_i32 : i32
    %1 = arith.addi %0, %arg2 : i32
    %c0_i32 = arith.constant 0 : i32
    %2 = arith.cmpi eq, %arg0, %c0_i32 : i32
    %c0_i32_0 = arith.constant 0 : i32
    %3 = arith.cmpi eq, %1, %c0_i32_0 : i32
    %4 = arith.andi %2, %3 : i1
    %5 = arith.extui %4 : i1 to i32
    %c0_i32_1 = arith.constant 0 : i32
    %6 = arith.cmpi ne, %5, %c0_i32_1 : i32
    scf.if %6 {
      %cst = arith.constant 0.000000e+00 : f32
      %18 = vector.broadcast %cst : f32 to vector<4x1xf32>
      %c0 = arith.constant 0 : index
      %c0_9 = arith.constant 0 : index
      %19 = vector.load %arg10[%c0, %c0_9] : memref<4x1xf32, #tpu.memory_space<vmem>>, vector<4x1xf32>
      tpu.vector_store %arg10[%c0, %c0_9], %18 {strides = array<i32>} : memref<4x1xf32, #tpu.memory_space<vmem>>, vector<4x1xf32>,
      %cst_10 = arith.constant 0.000000e+00 : f32
      %20 = vector.broadcast %cst_10 : f32 to vector<4x1xf32>
      %c0_11 = arith.constant 0 : index
      %c0_12 = arith.constant 0 : index
      %21 = vector.load %arg11[%c0_11, %c0_12] : memref<4x1xf32, #tpu.memory_space<vmem>>, vector<4x1xf32>
      tpu.vector_store %arg11[%c0_11, %c0_12], %20 {strides = array<i32>} : memref<4x1xf32, #tpu.memory_space<vmem>>, vector<4x1xf32>,
    } else {
    }
    %c0_i32_2 = arith.constant 0 : i32
    %7 = arith.cmpi eq, %arg0, %c0_i32_2 : i32
    %8 = arith.extui %7 : i1 to i32
    %c0_i32_3 = arith.constant 0 : i32
    %9 = arith.cmpi ne, %8, %c0_i32_3 : i32
    scf.if %9 {
      %c0 = arith.constant 0 : index
      %c0_9 = arith.constant 0 : index
      %c0_10 = arith.constant 0 : index
      %18 = vector.load %arg3[%c0, %c0_9, %c0_10] : memref<2x4x256xf32, #tpu.memory_space<vmem>>, vector<2x4x256xf32>
      %c0_11 = arith.constant 0 : index
      %c0_12 = arith.constant 0 : index
      %19 = vector.load %arg4[%c0_11, %c0_12] : memref<4x256xf32, #tpu.memory_space<vmem>>, vector<4x256xf32>
      %20 = vector.shape_cast %19 : vector<4x256xf32> to vector<1x4x256xf32>
      %21 = vector.broadcast %20 : vector<1x4x256xf32> to vector<2x4x256xf32>
      %22 = arith.addf %18, %21 : vector<2x4x256xf32>
      %cst = arith.constant 0.000000e+00 : f32
      %23 = vector.broadcast %cst : f32 to vector<2x4x256xf32>
      %24 = arith.maximumf %22, %23 : vector<2x4x256xf32>
      %25 = arith.index_cast %1 : i32 to index
      %c0_13 = arith.constant 0 : index
      %c0_14 = arith.constant 0 : index
      %c0_15 = arith.constant 0 : index
      %26 = vector.load %arg14[%25, %c0_13, %c0_14, %c0_15] : memref<1x2x4x256xf32, #tpu.memory_space<vmem>>, vector<1x2x4x256xf32>
      %27 = vector.shape_cast %26 : vector<1x2x4x256xf32> to vector<2x4x256xf32>
      %28 = vector.shape_cast %24 : vector<2x4x256xf32> to vector<1x2x4x256xf32>
      tpu.vector_store %arg14[%25, %c0_13, %c0_14, %c0_15], %28 {strides = array<i32>} : memref<1x2x4x256xf32, #tpu.memory_space<vmem>>, vector<1x2x4x256xf32>,
      %c0_16 = arith.constant 0 : index
      %c0_17 = arith.constant 0 : index
      %29 = vector.load %arg10[%c0_16, %c0_17] : memref<4x1xf32, #tpu.memory_space<vmem>>, vector<4x1xf32>
      %cst_18 = arith.constant dense<0.000000e+00> : vector<2x4xf32>
      %30 = vector.multi_reduction <add>, %24, %cst_18 [2] : vector<2x4x256xf32> to vector<2x4xf32>
      %31 = vector.shape_cast %30 : vector<2x4xf32> to vector<2x4x1xf32>
      %cst_19 = arith.constant dense<0.000000e+00> : vector<4x1xf32>
      %32 = vector.multi_reduction <add>, %31, %cst_19 [0] : vector<2x4x1xf32> to vector<4x1xf32>
      %33 = arith.addf %29, %32 : vector<4x1xf32>
      %c0_20 = arith.constant 0 : index
      %c0_21 = arith.constant 0 : index
      %34 = vector.load %arg10[%c0_20, %c0_21] : memref<4x1xf32, #tpu.memory_space<vmem>>, vector<4x1xf32>
      tpu.vector_store %arg10[%c0_20, %c0_21], %33 {strides = array<i32>} : memref<4x1xf32, #tpu.memory_space<vmem>>, vector<4x1xf32>,
      %c0_22 = arith.constant 0 : index
      %c0_23 = arith.constant 0 : index
      %35 = vector.load %arg11[%c0_22, %c0_23] : memref<4x1xf32, #tpu.memory_space<vmem>>, vector<4x1xf32>
      %36 = arith.mulf %24, %24 : vector<2x4x256xf32>
      %cst_24 = arith.constant dense<0.000000e+00> : vector<2x4xf32>
      %37 = vector.multi_reduction <add>, %36, %cst_24 [2] : vector<2x4x256xf32> to vector<2x4xf32>
      %38 = vector.shape_cast %37 : vector<2x4xf32> to vector<2x4x1xf32>
      %cst_25 = arith.constant dense<0.000000e+00> : vector<4x1xf32>
      %39 = vector.multi_reduction <add>, %38, %cst_25 [0] : vector<2x4x1xf32> to vector<4x1xf32>
      %40 = arith.addf %35, %39 : vector<4x1xf32>
      %c0_26 = arith.constant 0 : index
      %c0_27 = arith.constant 0 : index
      %41 = vector.load %arg11[%c0_26, %c0_27] : memref<4x1xf32, #tpu.memory_space<vmem>>, vector<4x1xf32>
      tpu.vector_store %arg11[%c0_26, %c0_27], %40 {strides = array<i32>} : memref<4x1xf32, #tpu.memory_space<vmem>>, vector<4x1xf32>,
    } else {
    }
    %c0_i32_4 = arith.constant 0 : i32
    %10 = arith.cmpi eq, %arg0, %c0_i32_4 : i32
    %c0_i32_5 = arith.constant 0 : i32
    %11 = arith.cmpi eq, %1, %c0_i32_5 : i32
    %12 = arith.andi %10, %11 : i1
    %13 = arith.extui %12 : i1 to i32
    %c0_i32_6 = arith.constant 0 : i32
    %14 = arith.cmpi ne, %13, %c0_i32_6 : i32
    scf.if %14 {
      %c0 = arith.constant 0 : index
      %c0_9 = arith.constant 0 : index
      %18 = vector.load %arg10[%c0, %c0_9] : memref<4x1xf32, #tpu.memory_space<vmem>>, vector<4x1xf32>
      %cst = arith.constant 0.001953125 : f32
      %19 = vector.broadcast %cst : f32 to vector<4x1xf32>
      %20 = arith.mulf %18, %19 : vector<4x1xf32>
      %c0_10 = arith.constant 0 : index
      %c0_11 = arith.constant 0 : index
      %21 = vector.load %arg11[%c0_10, %c0_11] : memref<4x1xf32, #tpu.memory_space<vmem>>, vector<4x1xf32>
      %cst_12 = arith.constant 0.001953125 : f32
      %22 = vector.broadcast %cst_12 : f32 to vector<4x1xf32>
      %23 = arith.mulf %21, %22 : vector<4x1xf32>
      %24 = arith.mulf %20, %20 : vector<4x1xf32>
      %25 = arith.subf %23, %24 : vector<4x1xf32>
      %cst_13 = arith.constant 0.000000e+00 : f32
      %26 = vector.broadcast %cst_13 : f32 to vector<4x1xf32>
      %27 = arith.maximumf %25, %26 : vector<4x1xf32>
      %cst_14 = arith.constant 9.99999974E-6 : f32
      %28 = vector.broadcast %cst_14 : f32 to vector<4x1xf32>
      %29 = arith.addf %27, %28 : vector<4x1xf32>
      %30 = math.rsqrt %29 : vector<4x1xf32>
      %c0_15 = arith.constant 0 : index
      %c0_16 = arith.constant 0 : index
      %31 = vector.load %arg5[%c0_15, %c0_16] : memref<4x1xf32, #tpu.memory_space<vmem>>, vector<4x1xf32>
      %32 = arith.mulf %31, %30 : vector<4x1xf32>
      %c0_17 = arith.constant 0 : index
      %c0_18 = arith.constant 0 : index
      %33 = vector.load %arg12[%c0_17, %c0_18] : memref<4x1xf32, #tpu.memory_space<vmem>>, vector<4x1xf32>
      tpu.vector_store %arg12[%c0_17, %c0_18], %32 {strides = array<i32>} : memref<4x1xf32, #tpu.memory_space<vmem>>, vector<4x1xf32>,
      %c0_19 = arith.constant 0 : index
      %c0_20 = arith.constant 0 : index
      %34 = vector.load %arg6[%c0_19, %c0_20] : memref<4x1xf32, #tpu.memory_space<vmem>>, vector<4x1xf32>
      %35 = arith.mulf %32, %20 : vector<4x1xf32>
      %36 = arith.subf %34, %35 : vector<4x1xf32>
      %c0_21 = arith.constant 0 : index
      %c0_22 = arith.constant 0 : index
      %37 = vector.load %arg13[%c0_21, %c0_22] : memref<4x1xf32, #tpu.memory_space<vmem>>, vector<4x1xf32>
      tpu.vector_store %arg13[%c0_21, %c0_22], %36 {strides = array<i32>} : memref<4x1xf32, #tpu.memory_space<vmem>>, vector<4x1xf32>,
    } else {
    }
    %c1_i32_7 = arith.constant 1 : i32
    %15 = arith.cmpi eq, %arg0, %c1_i32_7 : i32
    %16 = arith.extui %15 : i1 to i32
    %c0_i32_8 = arith.constant 0 : i32
    %17 = arith.cmpi ne, %16, %c0_i32_8 : i32
    scf.if %17 {
      %18 = arith.index_cast %1 : i32 to index
      %c0 = arith.constant 0 : index
      %c0_9 = arith.constant 0 : index
      %c0_10 = arith.constant 0 : index
      %19 = vector.load %arg14[%18, %c0, %c0_9, %c0_10] : memref<1x2x4x256xf32, #tpu.memory_space<vmem>>, vector<1x2x4x256xf32>
      %20 = vector.shape_cast %19 : vector<1x2x4x256xf32> to vector<2x4x256xf32>
      %c0_11 = arith.constant 0 : index
      %c0_12 = arith.constant 0 : index
      %21 = vector.load %arg12[%c0_11, %c0_12] : memref<4x1xf32, #tpu.memory_space<vmem>>, vector<4x1xf32>
      %22 = vector.shape_cast %21 : vector<4x1xf32> to vector<1x4x1xf32>
      %23 = vector.broadcast %22 : vector<1x4x1xf32> to vector<2x4x256xf32>
      %24 = arith.mulf %20, %23 : vector<2x4x256xf32>
      %c0_13 = arith.constant 0 : index
      %c0_14 = arith.constant 0 : index
      %25 = vector.load %arg13[%c0_13, %c0_14] : memref<4x1xf32, #tpu.memory_space<vmem>>, vector<4x1xf32>
      %26 = vector.shape_cast %25 : vector<4x1xf32> to vector<1x4x1xf32>
      %27 = vector.broadcast %26 : vector<1x4x1xf32> to vector<2x4x256xf32>
      %28 = arith.addf %24, %27 : vector<2x4x256xf32>
      %c0_15 = arith.constant 0 : index
      %c0_16 = arith.constant 0 : index
      %29 = vector.load %arg7[%c0_15, %c0_16] : memref<8x4xf32, #tpu.memory_space<vmem>>, vector<8x4xf32>
      %30 = vector.extract_strided_slice %29 {offsets = [0, 0], sizes = [8, 1], strides = [1, 1]} : vector<8x4xf32> to vector<8x1xf32>
      %31 = vector.shape_cast %30 : vector<8x1xf32> to vector<1x8x1xf32>
      %32 = vector.extract_strided_slice %28 {offsets = [0, 0, 0], sizes = [2, 1, 256], strides = [1, 1, 1]} : vector<2x4x256xf32> to vector<2x1x256xf32>
      %33 = vector.broadcast %31 : vector<1x8x1xf32> to vector<2x8x256xf32>
      %34 = vector.broadcast %32 : vector<2x1x256xf32> to vector<2x8x256xf32>
      %35 = arith.mulf %33, %34 : vector<2x8x256xf32>
      %36 = vector.extract_strided_slice %29 {offsets = [0, 1], sizes = [8, 1], strides = [1, 1]} : vector<8x4xf32> to vector<8x1xf32>
      %37 = vector.shape_cast %36 : vector<8x1xf32> to vector<1x8x1xf32>
      %38 = vector.extract_strided_slice %28 {offsets = [0, 1, 0], sizes = [2, 1, 256], strides = [1, 1, 1]} : vector<2x4x256xf32> to vector<2x1x256xf32>
      %39 = vector.broadcast %37 : vector<1x8x1xf32> to vector<2x8x256xf32>
      %40 = vector.broadcast %38 : vector<2x1x256xf32> to vector<2x8x256xf32>
      %41 = arith.mulf %39, %40 : vector<2x8x256xf32>
      %42 = vector.extract_strided_slice %29 {offsets = [0, 2], sizes = [8, 1], strides = [1, 1]} : vector<8x4xf32> to vector<8x1xf32>
      %43 = vector.shape_cast %42 : vector<8x1xf32> to vector<1x8x1xf32>
      %44 = vector.extract_strided_slice %28 {offsets = [0, 2, 0], sizes = [2, 1, 256], strides = [1, 1, 1]} : vector<2x4x256xf32> to vector<2x1x256xf32>
      %45 = vector.broadcast %43 : vector<1x8x1xf32> to vector<2x8x256xf32>
      %46 = vector.broadcast %44 : vector<2x1x256xf32> to vector<2x8x256xf32>
      %47 = arith.mulf %45, %46 : vector<2x8x256xf32>
      %48 = vector.extract_strided_slice %29 {offsets = [0, 3], sizes = [8, 1], strides = [1, 1]} : vector<8x4xf32> to vector<8x1xf32>
      %49 = vector.shape_cast %48 : vector<8x1xf32> to vector<1x8x1xf32>
      %50 = vector.extract_strided_slice %28 {offsets = [0, 3, 0], sizes = [2, 1, 256], strides = [1, 1, 1]} : vector<2x4x256xf32> to vector<2x1x256xf32>
      %51 = vector.broadcast %49 : vector<1x8x1xf32> to vector<2x8x256xf32>
      %52 = vector.broadcast %50 : vector<2x1x256xf32> to vector<2x8x256xf32>
      %53 = arith.mulf %51, %52 : vector<2x8x256xf32>
      %54 = arith.addf %35, %41 : vector<2x8x256xf32>
      %55 = arith.addf %47, %53 : vector<2x8x256xf32>
      %56 = arith.addf %54, %55 : vector<2x8x256xf32>
      %c0_17 = arith.constant 0 : index
      %c0_18 = arith.constant 0 : index
      %57 = vector.load %arg8[%c0_17, %c0_18] : memref<8x1xf32, #tpu.memory_space<vmem>>, vector<8x1xf32>
      %58 = vector.shape_cast %57 : vector<8x1xf32> to vector<1x8x1xf32>
      %59 = vector.broadcast %58 : vector<1x8x1xf32> to vector<2x8x256xf32>
      %60 = arith.addf %56, %59 : vector<2x8x256xf32>
      %c0_19 = arith.constant 0 : index
      %c0_20 = arith.constant 0 : index
      %c0_21 = arith.constant 0 : index
      %61 = vector.load %arg9[%c0_19, %c0_20, %c0_21] : memref<2x8x256xf32, #tpu.memory_space<vmem>>, vector<2x8x256xf32>
      tpu.vector_store %arg9[%c0_19, %c0_20, %c0_21], %60 {strides = array<i32>} : memref<2x8x256xf32, #tpu.memory_space<vmem>>, vector<2x8x256xf32>,
    } else {
    }
    return
  }
  func.func @transform_0(%arg0: i32, %arg1: i32, %arg2: i32) -> (i32, i32, i32) {
    %c1_i32 = arith.constant 1 : i32
    %0 = arith.subi %c1_i32, %arg0 : i32
    %1 = arith.muli %arg2, %0 : i32
    %c0_i32 = arith.constant 0 : i32
    %2 = arith.muli %c0_i32, %arg0 : i32
    %3 = arith.addi %1, %2 : i32
    %c1_i32_0 = arith.constant 1 : i32
    %4 = arith.subi %c1_i32_0, %arg0 : i32
    %5 = arith.muli %arg1, %4 : i32
    %c0_i32_1 = arith.constant 0 : i32
    %6 = arith.muli %c0_i32_1, %arg0 : i32
    %7 = arith.addi %5, %6 : i32
    %c0_i32_2 = arith.constant 0 : i32
    %c0_i32_3 = arith.constant 0 : i32
    return %3, %c0_i32_2, %7 : i32, i32, i32
  }
  func.func @transform_1(%arg0: i32, %arg1: i32, %arg2: i32) -> (i32, i32) {
    %c1_i32 = arith.constant 1 : i32
    %0 = arith.subi %c1_i32, %arg0 : i32
    %1 = arith.muli %arg1, %0 : i32
    %c0_i32 = arith.constant 0 : i32
    %2 = arith.muli %c0_i32, %arg0 : i32
    %3 = arith.addi %1, %2 : i32
    %c0_i32_0 = arith.constant 0 : i32
    %c0_i32_1 = arith.constant 0 : i32
    return %c0_i32_0, %3 : i32, i32
  }
  func.func @transform_2(%arg0: i32, %arg1: i32, %arg2: i32) -> (i32, i32) {
    %c0_i32 = arith.constant 0 : i32
    %c0_i32_0 = arith.constant 0 : i32
    %c0_i32_1 = arith.constant 0 : i32
    return %c0_i32, %c0_i32_0 : i32, i32
  }
  func.func @transform_3(%arg0: i32, %arg1: i32, %arg2: i32) -> (i32, i32) {
    %c0_i32 = arith.constant 0 : i32
    %c0_i32_0 = arith.constant 0 : i32
    %c0_i32_1 = arith.constant 0 : i32
    return %c0_i32, %c0_i32_0 : i32, i32
  }
  func.func @transform_4(%arg0: i32, %arg1: i32, %arg2: i32) -> (i32, i32) {
    %c0_i32 = arith.constant 0 : i32
    %c0_i32_0 = arith.constant 0 : i32
    %c0_i32_1 = arith.constant 0 : i32
    return %c0_i32, %c0_i32_0 : i32, i32
  }
  func.func @transform_5(%arg0: i32, %arg1: i32, %arg2: i32) -> (i32, i32) {
    %c0_i32 = arith.constant 0 : i32
    %c0_i32_0 = arith.constant 0 : i32
    %c0_i32_1 = arith.constant 0 : i32
    return %c0_i32, %c0_i32_0 : i32, i32
  }
  func.func @transform_6(%arg0: i32, %arg1: i32, %arg2: i32) -> (i32, i32, i32) {
    %0 = arith.muli %arg2, %arg0 : i32
    %1 = arith.muli %arg1, %arg0 : i32
    %c0_i32 = arith.constant 0 : i32
    %c0_i32_0 = arith.constant 0 : i32
    return %0, %c0_i32, %1 : i32, i32, i32
  }
}

</mosaic_0001>

<bundles_post_ra>
// kernel: tpu_custom_call.1
= control target key start
LH: loop header
LB: loop body
LE: loop exit
PB: predicated region body
PF: predicated region fallthrough
CT: control target
= control target key end

     0   :  { %11 = vsyncpa [#allocation8], 0  ;;  %s981_s0 = inlined_call_operand.vmem [shape: f32[2,4,256], index: 0, kind: input, shape index: {}]   ;;  %s982_s1 = inlined_call_operand.vmem [shape: f32[4,256], index: 1, kind: input, shape index: {}]   ;;  %s983_s2 = inlined_call_operand.vmem [shape: f32[4,1], index: 2, kind: input, shape index: {}]   ;;  %s984_s3 = inlined_call_operand.vmem [shape: f32[4,1], index: 3, kind: input, shape index: {}]   ;;  %s985_s4 = inlined_call_operand.vmem [shape: f32[8,4], index: 4, kind: input, shape index: {}]   ;;  %s986_s5 = inlined_call_operand.vmem [shape: f32[8,1], index: 5, kind: input, shape index: {}]   ;;  %s987_s6 = inlined_call_operand.hbm [shape: f32[2,8,256], index: 6, kind: output, shape index: {}]  }
   0x1   :  { %13 = vsyncpa [#allocation8 + $0x1], 0  ;;  %s902_s21 = smov 0   ;;  %s904_s22 = smov 0  }
   0x2   :  { %s906_s23 = smov 0  }
   0x3 LB: > { %s736_s24 = sadd.s32 4294967295, %s856_s23   ;;  %s737_s25 = sadd.s32 4294967294, %s856_s23   ;;  %s856_s23 = sphi %s906_s23, %s19_s23   ;;  %s852_s22 = sphi %s904_s22, %s989_s22   ;;  %s848_s21 = sphi %s902_s21, %s988_s21  }
   0x4   : > { %s38_s26 = sadd.s32 1, %s852_s22  ;;  %p742_p0 = scmp.ge.s32.totalorder %s856_s23, 1 }
   0x5   : > { %p40_p1 = scmp.ge.s32.totalorder %s38_s26, 2  ;;  %p280_p2 = scmp.lt.s32.totalorder %s856_s23, 3 }
   0x7   : > { %s991_s26 = smov (%p40_p1, %s38_s26), 0  ;;  %p281_p3 = pnand %p742_p0, %p280_p2 }
   0x8   : > { %p358_p4 = scmp.eq.s32.totalorder (!%p281_p3), %s848_s21, 0 }
   0x9   : > { %284 = sbr.rel (%p281_p3) target bundleno = 385 (0x181), region = 44 }
   0xe   : > { %363 = sbr.rel (!%p358_p4) target bundleno = 19 (0x13), region = 48  ;;  %vm364_vm0 = vcmask (%p358_p4), 3072   ;;  %v858_v0 = vmov (%p358_p4), 0.0  }
   0xf   : > { %365 = vst.msk [vmem:[#allocation2] sm:$0xf] (%p358_p4), %vm364_vm0, %v858_v0 }
  0x10   : > { %366 = vst.msk [vmem:[#allocation3] sm:$0xf] (%p358_p4), %vm364_vm0, %v858_v0 }
  0x13 PF: > { %p744_p5 = scmp.ne.s32.totalorder %s848_s21, 0 }
  0x15   : > { %369 = sbr.rel (%p744_p5) target bundleno = 181 (0xb5), region = 52 }
  0x1a   : > { %v370_v1 = vld [vmem:[%s981_s0] sm:$0xff]  ;;  %v371_v3 = vld [vmem:[%s981_s0 + $0x8] sm:$0xff]  ;;  %vm396_vm1 = vcmask 1043456   ;;  %vm411_vm2 = vcmask 3072  }
  0x1b   : > { %v372_v2 = vld [vmem:[%s982_s1] sm:$0xff]  ;;  %v382_v34 = vld [vmem:[#allocation2] sm:$0xf]  ;;  %v413_v40 = vld [vmem:[#allocation3] sm:$0xf] }
  0x1c   : > { %v373_v4 = vadd.f32 %v372_v2, %v370_v1  ;;  %v374_v5 = vadd.f32 %v372_v2, %v371_v3 }
  0x1e   : > { %v375_v6 = vmax.f32 %v373_v4, 0.0  ;;  %v376_v7 = vmax.f32 %v374_v5, 0.0 }
  0x20   : > { %385 = vst [vmem:[#allocation1] ss:$2 sm:$0xff] %v375_v6  ;;  %v414_v8 = vmul.f32 %v375_v6, %v375_v6  ;;  %v415_v11 = vmul.f32 %v376_v7, %v376_v7 }
  0x21   : > { %380 = vst [vmem:[#allocation6] sm:$0xff] %v375_v6 }
  0x22   : > { %381 = vst [vmem:[#allocation6 + $0x8] sm:$0xff] %v376_v7 }
  0x23   : > { %389 = vst [vmem:[#allocation1 + $0x10] ss:$2 sm:$0xff] %v376_v7 }
  0x27   : > { %v386_v9 = vld.sshfl [vmem:[#allocation1] sm:$0xff pattern:$0x75316420]  ;;  %v387_v10 = vld.sshfl [vmem:[#allocation1 + $0x8] sm:$0xff pattern:$0x75316420] }
  0x28   : > { %v397_v12 = vsel %vm396_vm1, %v386_v9, 0.0  ;;  %v398_v13 = vsel %vm396_vm1, %v387_v10, 0.0  ;;  %418 = vst [vmem:[#allocation1] ss:$2 sm:$0xff] %v414_v8 }
  0x29   : > { %v399_v14 = vadd.f32 %v398_v13, %v397_v12 }
  0x2a   : > { %v390_v15 = vld.sshfl [vmem:[#allocation1 + $0x10] sm:$0xff pattern:$0x75316420]  ;;  %v391_v16 = vld.sshfl [vmem:[#allocation1 + $0x18] sm:$0xff pattern:$0x75316420] }
  0x2b   : > { %400 = vadd.xlane.f32.xlu0 %v399_v14  ;;  %422 = vst [vmem:[#allocation1 + $0x10] ss:$2 sm:$0xff] %v415_v11  ;;  %v402_v17 = vsel %vm396_vm1, %v390_v15, 0.0  ;;  %v403_v18 = vsel %vm396_vm1, %v391_v16, 0.0 }
  0x2c   : > { %v404_v21 = vadd.f32 %v403_v18, %v402_v17 }
  0x2f   : > { %v419_v19 = vld.sshfl [vmem:[#allocation1] sm:$0xff pattern:$0x75316420]  ;;  %v420_v20 = vld.sshfl [vmem:[#allocation1 + $0x8] sm:$0xff pattern:$0x75316420] }
  0x30   : > { %v429_v22 = vsel %vm396_vm1, %v419_v19, 0.0  ;;  %v430_v23 = vsel %vm396_vm1, %v420_v20, 0.0 }
  0x31   : > { %v431_v24 = vadd.f32 %v430_v23, %v429_v22 }
  0x32   : > { %v423_v25 = vld.sshfl [vmem:[#allocation1 + $0x10] sm:$0xff pattern:$0x75316420]  ;;  %v424_v26 = vld.sshfl [vmem:[#allocation1 + $0x18] sm:$0xff pattern:$0x75316420] }
  0x33   : > { %432 = vadd.xlane.f32.xlu1 %v431_v24  ;;  %405 = vadd.xlane.f32.xlu0 %v404_v21  ;;  %v434_v27 = vsel %vm396_vm1, %v423_v25, 0.0  ;;  %v435_v28 = vsel %vm396_vm1, %v424_v26, 0.0 }
  0x34   : > { %v436_v29 = vadd.f32 %v435_v28, %v434_v27 }
  0x3b   : > { %437 = vadd.xlane.f32.xlu1 %v436_v29 }
  0x9e   : > { %v401_v30 = vpop.xlane.xlu0 %400 }
  0x9f   : > { %v407_v31 = vsel %vm396_vm1, %v401_v30, 0.0 }
  0xa6   : > { %v433_v32 = vpop.xlane.xlu1 %432  ;;  %v406_v33 = vpop.xlane.xlu0 %405 }
  0xa7   : > { %v408_v35 = vsel %vm396_vm1, %v406_v33, 0.0  ;;  %v439_v39 = vsel %vm396_vm1, %v433_v32, 0.0 }
  0xa8   : > { %v409_v36 = vadd.f32 %v408_v35, %v407_v31 }
  0xaa   : > { %v410_v37 = vadd.f32 %v409_v36, %v382_v34 }
  0xac   : > { %412 = vst.msk [vmem:[#allocation2] sm:$0xf] %vm411_vm2, %v410_v37 }
  0xae   : > { %v438_v38 = vpop.xlane.xlu1 %437 }
  0xaf   : > { %v440_v41 = vsel %vm396_vm1, %v438_v38, 0.0 }
  0xb0   : > { %v441_v42 = vadd.f32 %v440_v41, %v439_v39 }
  0xb2   : > { %v442_v43 = vadd.f32 %v441_v42, %v413_v40 }
  0xb4   : > { %443 = vst.msk [vmem:[#allocation3] sm:$0xf] %vm411_vm2, %v442_v43 }
  0xb5 PF: > { %445 = sbr.rel (!%p358_p4) target bundleno = 221 (0xdd), region = 56  ;;  %v446_v44 = vld [vmem:[#allocation2] sm:$0xf] (%p358_p4)  ;;  %v464_v58 = vld [vmem:[%s983_s2] sm:$0xf] (%p358_p4)  ;;  %vm466_vm6 = vcmask (%p358_p4), 3072  }
  0xb6   : > { %v447_v46 = vmul.f32 (%p358_p4), 0.001953125, %v446_v44  ;;  %v468_v61 = vld [vmem:[%s984_s3] sm:$0xf] (%p358_p4) }
  0xb8   : > { %v450_v48 = vmul.f32 (%p358_p4), %v447_v46, %v447_v46 }
  0xbb   : > { %v448_v45 = vld [vmem:[#allocation3] sm:$0xf] }
  0xbc   : > { %v449_v47 = vmul.f32 0.001953125, %v448_v45 }
  0xbe   : > { %v451_v49 = vsub.f32 %v449_v47, %v450_v48 }
  0xc0   : > { %v452_v50 = vmax.f32 %v451_v49, 0.0 }
  0xc2   : > { %v453_v51 = vadd.f32 1e-05, %v452_v50 }
  0xc4   : > { %795 = vrsqrt.f32 %v453_v51  ;;  %vm460_vm3 = vweird.f32 %v453_v51 }
  0xca   : > { %v796_v52 = vpop.eup %795 }
  0xcb   : > { %v455_v53 = vmul.f32 %v796_v52, %v453_v51  ;;  %vm461_vm4 = vweird.f32 %v796_v52 }
  0xcc   : > { %vm462_vm5 = vmor %vm460_vm3, %vm461_vm4 }
  0xcd   : > { %v456_v54 = vmul.f32 %v796_v52, %v455_v53 }
  0xcf   : > { %v457_v55 = vmul.f32 0.5, %v456_v54 }
  0xd1   : > { %v458_v56 = vsub.f32 1.5, %v457_v55 }
  0xd3   : > { %v459_v57 = vmul.f32 %v796_v52, %v458_v56 }
  0xd5   : > { %v463_v59 = vsel %vm462_vm5, %v796_v52, %v459_v57 }
  0xd6   : > { %v465_v60 = vmul.f32 %v464_v58, %v463_v59 }
  0xd8   : > { %467 = vst.msk [vmem:[#allocation4] sm:$0xf] %vm466_vm6, %v465_v60  ;;  %v469_v62 = vmul.f32 %v465_v60, %v447_v46 }
  0xda   : > { %v470_v63 = vsub.f32 %v468_v61, %v469_v62 }
  0xdc   : > { %471 = vst.msk [vmem:[#allocation5] sm:$0xf] %vm466_vm6, %v470_v63 }
  0xdd PF: > { %p745_p6 = scmp.ne.s32.totalorder %s848_s21, 1 }
  0xdf   : > { %475 = sbr.rel (%p745_p6) target bundleno = 381 (0x17d), region = 60 }
  0xe4   : > { %v481_v0 = vld [vmem:[#allocation4] sm:$0xf]  ;;  %v505_v1 = vld [vmem:[%s985_s4] sm:$0xff]  ;;  %v859_v2 = vmov 0   ;;  %v860_v3 = vmov 2   ;;  %v861_v5 = vmov 1  }
  0xe5   : > { %797 = vset.pattern.permute.xlu0 %v859_v2  ;;  %798 = vset.pattern.permute.xlu1 %v859_v2  ;;  %v493_v4 = vld [vmem:[#allocation5] sm:$0xf]  ;;  %v862_v6 = vmov 3   ;;  %v601_v7 = vld [vmem:[%s986_s5] sm:$0xff]  ;;  %v863_v8 = vmov 839922192  }
  0xe6   : > { %484 = vperm.xlu0 %797, %v481_v0   ;;  %508 = vperm.xlu1 %798, %v505_v1   ;;  %v487_v9 = vunpack.c.l.s4 %v863_v8  ;;  %v479_v13 = vld [vmem:[#allocation6] sm:$0xff]  ;;  %v480_v14 = vld [vmem:[#allocation6 + $0x8] sm:$0xff] }
  0xe7   : > { %800 = vset.pattern.permute.xlu2 %v860_v3 }
  0xe8   : > { %550 = vperm.xlu2 %800, %v505_v1   ;;  %v488_v11 = vunpack.c.0.s8 %v487_v9 }
  0xee   : > { %496 = vperm.xlu0 %797, %v493_v4   ;;  %799 = vset.pattern.permute.xlu1 %v861_v5 }
  0xef   : > { %530 = vperm.xlu1 %799, %v505_v1  }
  0xf0   : > { %801 = vset.pattern.permute.xlu2 %v862_v6 }
  0xf1   : > { %570 = vperm.xlu2 %801, %v505_v1  }
  0xf6   : > { %604 = vperm.xlu0 %797, %v601_v7  }
 0x142   : > { %v551_v15 = vpop.permute.xlu2 %550 }
 0x14b   : > { %v571_v39 = vpop.permute.xlu2 %570 }
 0x158   : > { %v485_v10 = vpop.permute.xlu0 %484  ;;  %v509_v22 = vpop.permute.xlu1 %508 }
 0x159   : > { %v489_v12 = vperm.slane %v485_v10, %v488_v11 }
 0x15b   : > { %v491_v17 = vmul.f32 %v489_v12, %v479_v13  ;;  %v492_v18 = vmul.f32 %v489_v12, %v480_v14 }
 0x160   : > { %v497_v16 = vpop.permute.xlu0 %496 }
 0x161   : > { %v501_v19 = vperm.slane %v497_v16, %v488_v11  ;;  %v531_v60 = vpop.permute.xlu1 %530 }
 0x163   : > { %v503_v20 = vadd.f32 %v501_v19, %v491_v17  ;;  %v504_v21 = vadd.f32 %v501_v19, %v492_v18 }
 0x165   : > { %v553_v23 = vperm.slane %v503_v20, 2  ;;  %v554_v24 = vperm.slane %v503_v20, 6  ;;  %v555_v25 = vperm.slane %v504_v21, 2  ;;  %v556_v26 = vperm.slane %v504_v21, 6 }
 0x166   : > { %v573_v27 = vperm.slane %v503_v20, 3  ;;  %v574_v28 = vperm.slane %v503_v20, 7  ;;  %v575_v29 = vperm.slane %v504_v21, 3  ;;  %v576_v30 = vperm.slane %v504_v21, 7 }
 0x167   : > { %v561_v31 = vperm.slane %v553_v23, 2  ;;  %v562_v32 = vperm.slane %v554_v24, 2  ;;  %v563_v33 = vperm.slane %v555_v25, 2  ;;  %v564_v34 = vperm.slane %v556_v26, 2 }
 0x168   : > { %v581_v35 = vperm.slane %v573_v27, 3  ;;  %v582_v36 = vperm.slane %v574_v28, 3  ;;  %v583_v37 = vperm.slane %v575_v29, 3  ;;  %v584_v38 = vperm.slane %v576_v30, 3 }
 0x169   : > { %v565_v40 = vmul.f32 %v561_v31, %v551_v15  ;;  %v566_v41 = vmul.f32 %v562_v32, %v551_v15  ;;  %v567_v42 = vmul.f32 %v563_v33, %v551_v15  ;;  %v568_v43 = vmul.f32 %v564_v34, %v551_v15 }
 0x16a   : > { %v513_v44 = vperm.slane %v503_v20, 0  ;;  %v514_v45 = vperm.slane %v503_v20, 4  ;;  %v515_v46 = vperm.slane %v504_v21, 0  ;;  %v516_v47 = vperm.slane %v504_v21, 4 }
 0x16b   : > { %v585_v48 = vmul.f32 %v581_v35, %v571_v39  ;;  %v586_v49 = vmul.f32 %v582_v36, %v571_v39  ;;  %v587_v50 = vmul.f32 %v583_v37, %v571_v39  ;;  %v588_v51 = vmul.f32 %v584_v38, %v571_v39 }
 0x16c   : > { %v521_v52 = vperm.slane %v513_v44, 0  ;;  %v522_v53 = vperm.slane %v514_v45, 0  ;;  %v523_v54 = vperm.slane %v515_v46, 0  ;;  %v524_v55 = vperm.slane %v516_v47, 0 }
 0x16d   : > { %v533_v56 = vperm.slane %v503_v20, 1  ;;  %v534_v57 = vperm.slane %v503_v20, 5  ;;  %v535_v58 = vperm.slane %v504_v21, 1  ;;  %v536_v59 = vperm.slane %v504_v21, 5  ;;  %v605_v21 = vpop.permute.xlu0 %604 }
 0x16e   : > { %v525_v61 = vmul.f32 %v521_v52, %v509_v22  ;;  %v526_v62 = vmul.f32 %v522_v53, %v509_v22  ;;  %v527_v63 = vmul.f32 %v523_v54, %v509_v22  ;;  %v528_v0 = vmul.f32 %v524_v55, %v509_v22 }
 0x16f   : > { %v541_v1 = vperm.slane %v533_v56, 1  ;;  %v542_v2 = vperm.slane %v534_v57, 1  ;;  %v543_v3 = vperm.slane %v535_v58, 1  ;;  %v544_v4 = vperm.slane %v536_v59, 1 }
 0x170   : > { %v593_v5 = vadd.f32 %v585_v48, %v565_v40  ;;  %v594_v6 = vadd.f32 %v586_v49, %v566_v41  ;;  %v595_v7 = vadd.f32 %v587_v50, %v567_v42  ;;  %v596_v8 = vadd.f32 %v588_v51, %v568_v43 }
 0x171   : > { %v545_v9 = vmul.f32 %v541_v1, %v531_v60  ;;  %v546_v10 = vmul.f32 %v542_v2, %v531_v60  ;;  %v547_v11 = vmul.f32 %v543_v3, %v531_v60  ;;  %v548_v12 = vmul.f32 %v544_v4, %v531_v60 }
 0x173   : > { %v589_v13 = vadd.f32 %v545_v9, %v525_v61  ;;  %v590_v14 = vadd.f32 %v546_v10, %v526_v62  ;;  %v591_v15 = vadd.f32 %v547_v11, %v527_v63  ;;  %v592_v16 = vadd.f32 %v548_v12, %v528_v0 }
 0x175   : > { %v597_v17 = vadd.f32 %v593_v5, %v589_v13  ;;  %v598_v18 = vadd.f32 %v594_v6, %v590_v14  ;;  %v599_v19 = vadd.f32 %v595_v7, %v591_v15  ;;  %v600_v20 = vadd.f32 %v596_v8, %v592_v16 }
 0x177   : > { %v607_v22 = vadd.f32 %v605_v21, %v597_v17  ;;  %v608_v23 = vadd.f32 %v605_v21, %v598_v18  ;;  %v609_v24 = vadd.f32 %v605_v21, %v599_v19  ;;  %v610_v25 = vadd.f32 %v605_v21, %v600_v20 }
 0x179   : > { %611 = vst [vmem:[#allocation7] sm:$0xff] %v607_v22 }
 0x17a   : > { %612 = vst [vmem:[#allocation7 + $0x8] sm:$0xff] %v608_v23 }
 0x17b   : > { %613 = vst [vmem:[#allocation7 + $0x10] sm:$0xff] %v609_v24 }
 0x17c   : > { %614 = vst [vmem:[#allocation7 + $0x18] sm:$0xff] %v610_v25 }
 0x17d PF: > { %p759_p7 = scmp.eq.s32.totalorder %s736_s24, 1  ;;  %s635_s19 = sshll.u32 %s987_s6, 4  ;;  %s636_s19 = int_to_ptr.hbm [resolvable:$true] %s635_s19 }
 0x17e   : > { %s864_s20 = smov [#allocation7]   ;;  %s865_s27 = smov 256  }
 0x17f   : > { %s633_s21 = sshll.u32 %s864_s20, 4  ;;  %s866_s28 = smov 16   ;;  %s634_s21 = int_to_ptr.vmem [resolvable:$true] %s633_s21 }
 0x180   : > { %752 = dma.vmem_to_hbm [thread:$0]  (%p759_p7), %s634_s21, 512, %s636_s19, [#allocation8], %s865_s27, %s865_s27, %s866_s28  }
 0x181 PF: > { %p760_p8 = scmp.ge.s32.totalorder %s856_s23, 2  ;;  %p761_p9 = scmp.eq.s32.totalorder %s737_s25, 1 }
 0x183   : > { %p756_p10 = pnand %p761_p9, %p760_p8 }
 0x185   : > { %p757_p11 = pneg %p756_p10 }
 0x187   : > { %843 = dma.done.wait (%p757_p11), [#allocation8], 512  }
 0x188   : > { %845 = vsyncadd (%p757_p11), [#allocation8], 4294966784  ;;  %s19_s23 = sadd.s32 1, %s856_s23   ;;  %s988_s21 = smov %s852_s22 }
 0x189   : > { %p16_p12 = scmp.ge.s32.totalorder %s19_s23, 4   ;;  %s989_s22 = smov %s991_s26 }
 0x18b   :  { %18 = sbr.rel (!%p16_p12) target bundleno = 3 (0x3), region = 102 }
 0x190   :  { %657 = vsyncpa [#allocation8], 1 }
 0x191   :  { %659 = vsyncpa [#allocation8 + $0x1], 1 }

</bundles_post_ra>
